<compile_context>
chip_gen: v6e
topology: v6e:2x2x1
jax: 0.10.0
libtpu: 0.0.40
codegen_flags: <defaults>
</compile_context>

<pallas_src>
import jax
import jax.numpy as jnp
from jax.experimental import pallas as pl
from jax.experimental.pallas import tpu as pltpu

LANE = 128


def _round_up(x, m):
    return (x + m - 1) // m * m


def _gcn_fused_kernel(a_ref, x_ref, w1_ref, b1_ref, w2_ref, b2_ref, o_ref, h_scr):
    """Fused 2-layer GCN: out = A @ (relu(A @ (X@W1) + b1) @ W2) + b2.

    a_ref:  (N, N)        bf16   normalized adjacency
    x_ref:  (N, IN_PAD)   bf16   node features (lane-padded)
    w1_ref: (IN_PAD, H_PAD) bf16, b1_ref: (1, H_PAD) f32
    w2_ref: (H_PAD, C_PAD)  bf16, b2_ref: (1, C_PAD) f32
    o_ref:  (N, C_PAD)    f32
    h_scr:  (N, H_PAD)    f32 VMEM scratch holding the hidden activation
    """
    # ---- Layer 1: h = relu(A @ (X @ W1) + b1) ----
    xw = jnp.dot(x_ref[...], w1_ref[...], preferred_element_type=jnp.float32)
    agg1 = jnp.dot(a_ref[...], xw.astype(jnp.bfloat16),
                   preferred_element_type=jnp.float32)
    h_scr[...] = jnp.maximum(agg1 + b1_ref[...], 0.0)        # f32 epilogue

    # ---- Layer 2: out = A @ (h @ W2) + b2 ----
    hw = jnp.dot(h_scr[...].astype(jnp.bfloat16), w2_ref[...],
                 preferred_element_type=jnp.float32)
    agg2 = jnp.dot(a_ref[...], hw.astype(jnp.bfloat16),
                   preferred_element_type=jnp.float32)
    o_ref[...] = (agg2 + b2_ref[...]).astype(o_ref.dtype)


def _full_spec(shape):
    # Whole-array block, no grid: nullary index_map.
    return pl.BlockSpec(shape, lambda: (0,) * len(shape))


def gcn_forward(a_norm, in_feat, params, num_classes):
    """Fused GCN forward. Returns (N, num_classes) float32 logits."""
    w1, b1, w2, b2 = params
    n, in_feats = in_feat.shape
    h_feats = w1.shape[1]

    in_pad = _round_up(in_feats, LANE)
    h_pad = _round_up(h_feats, LANE)
    c_pad = _round_up(num_classes, LANE)

    # Zero-pad feature / hidden / class dims to 128-lane multiples and cast the
    # matmul operands to bf16 (f32 accumulation inside the kernel). Padded
    # columns are all-zero, so results in the real columns are unchanged.
    x_p = jnp.zeros((n, in_pad), jnp.bfloat16).at[:, :in_feats].set(
        in_feat.astype(jnp.bfloat16))
    w1_p = jnp.zeros((in_pad, h_pad), jnp.bfloat16).at[:in_feats, :h_feats].set(
        w1.astype(jnp.bfloat16))
    b1_p = jnp.zeros((1, h_pad), jnp.float32).at[:, :h_feats].set(b1)
    w2_p = jnp.zeros((h_pad, c_pad), jnp.bfloat16).at[:h_feats, :num_classes].set(
        w2.astype(jnp.bfloat16))
    b2_p = jnp.zeros((1, c_pad), jnp.float32).at[:, :num_classes].set(b2)
    a_bf = a_norm.astype(jnp.bfloat16)

    out_p = pl.pallas_call(
        _gcn_fused_kernel,
        out_shape=jax.ShapeDtypeStruct((n, c_pad), jnp.float32),
        in_specs=[_full_spec(a_bf.shape), _full_spec(x_p.shape),
                  _full_spec(w1_p.shape), _full_spec(b1_p.shape),
                  _full_spec(w2_p.shape), _full_spec(b2_p.shape)],
        out_specs=_full_spec((n, c_pad)),
        scratch_shapes=[pltpu.VMEM((n, h_pad), jnp.float32)],
    )(a_bf, x_p, w1_p, b1_p, w2_p, b2_p)

    return out_p[:, :num_classes]


def make_normalized_adjacency(key, n, edge_prob=0.05):
    """Dense symmetric adjacency with DGL norm='both' normalization."""
    raw = jax.random.uniform(key, (n, n)) < edge_prob
    adj = jnp.logical_or(raw, raw.T).astype(jnp.float32)
    adj = adj * (1.0 - jnp.eye(n, dtype=jnp.float32))   # no self-loops (DGL default)
    deg = jnp.maximum(adj.sum(axis=1), 1.0)             # DGL clamps degree to >= 1
    d_inv_sqrt = 1.0 / jnp.sqrt(deg)
    return adj * d_inv_sqrt[:, None] * d_inv_sqrt[None, :]


def init_params(key, in_feats, h_feats, num_classes):
    """Glorot-uniform weights + zero bias, matching DGL GraphConv init."""
    k1, k2 = jax.random.split(key)

    def glorot(k, fan_in, fan_out):
        limit = jnp.sqrt(6.0 / (fan_in + fan_out))
        return jax.random.uniform(k, (fan_in, fan_out), jnp.float32, -limit, limit)

    w1 = glorot(k1, in_feats, h_feats)
    b1 = jnp.zeros((1, h_feats), jnp.float32)
    w2 = glorot(k2, h_feats, num_classes)
    b2 = jnp.zeros((1, num_classes), jnp.float32)
    return (w1, b1, w2, b2)


if __name__ == "__main__":
    # Small, Cora-like synthetic problem: 128 nodes, 64 input feats,
    # 32 hidden feats, 8 classes.  (Real Cora graph loading is host-side
    # DGL data plumbing, replaced here by a synthetic normalized adjacency.)
    N, IN_FEATS, H_FEATS, NUM_CLASSES = 128, 64, 32, 8

    key = jax.random.PRNGKey(0)
    k_adj, k_feat, k_param = jax.random.split(key, 3)

    a_norm = make_normalized_adjacency(k_adj, N)
    in_feat = jax.random.normal(k_feat, (N, IN_FEATS), jnp.float32)
    params = init_params(k_param, IN_FEATS, H_FEATS, NUM_CLASSES)

    out = gcn_forward(a_norm, in_feat, params, NUM_CLASSES)
    out = jax.block_until_ready(out)

    # Cross-check against a plain-JAX f32 reference of the same math.
    # Tolerance is relaxed because the kernel uses bf16 MXU inputs
    # (accumulation stays f32).
    w1, b1, w2, b2 = params
    ref = a_norm @ (in_feat @ w1) + b1
    ref = jnp.maximum(ref, 0.0)
    ref = a_norm @ (ref @ w2) + b2

    assert out.shape == (N, NUM_CLASSES)
    assert jnp.allclose(out, ref, atol=5e-2, rtol=5e-2), (
        float(jnp.max(jnp.abs(out - ref))))

    print("KERNEL_OK")
</pallas_src>

<mosaic_0001>
module attributes {stable_mosaic.version = 11 : i64} {
  func.func @_gcn_fused_kernel(%arg0: memref<128x128xbf16, #tpu.memory_space<vmem>>, %arg1: memref<128x128xbf16, #tpu.memory_space<vmem>>, %arg2: memref<128x128xbf16, #tpu.memory_space<vmem>>, %arg3: memref<1x128xf32, #tpu.memory_space<vmem>>, %arg4: memref<128x128xbf16, #tpu.memory_space<vmem>>, %arg5: memref<1x128xf32, #tpu.memory_space<vmem>>, %arg6: memref<128x128xf32, #tpu.memory_space<vmem>>, %arg7: memref<128x128xf32, #tpu.memory_space<vmem>>) attributes {dimension_semantics = [], scalar_prefetch = 0 : i64, scratch_operands = 1 : i64, tpu.core_type = #tpu.core_type<tc>} {
    %c0 = arith.constant 0 : index
    %c0_0 = arith.constant 0 : index
    %0 = vector.load %arg1[%c0, %c0_0] : memref<128x128xbf16, #tpu.memory_space<vmem>>, vector<128x128xbf16>
    %c0_1 = arith.constant 0 : index
    %c0_2 = arith.constant 0 : index
    %1 = vector.load %arg2[%c0_1, %c0_2] : memref<128x128xbf16, #tpu.memory_space<vmem>>, vector<128x128xbf16>
    %cst = arith.constant dense<0.000000e+00> : vector<128x128xf32>
    %2 = tpu.matmul %0, %1, %cst {dimension_numbers = #tpu.dot_dimension_numbers<[1], [0], [0], [1], [0, 0, 1, 1], [], []>} : vector<128x128xbf16>, vector<128x128xbf16>, vector<128x128xf32> -> vector<128x128xf32>
    %c0_3 = arith.constant 0 : index
    %c0_4 = arith.constant 0 : index
    %3 = vector.load %arg0[%c0_3, %c0_4] : memref<128x128xbf16, #tpu.memory_space<vmem>>, vector<128x128xbf16>
    %4 = arith.truncf %2 : vector<128x128xf32> to vector<128x128xbf16>
    %cst_5 = arith.constant dense<0.000000e+00> : vector<128x128xf32>
    %5 = tpu.matmul %3, %4, %cst_5 {dimension_numbers = #tpu.dot_dimension_numbers<[1], [0], [0], [1], [0, 0, 1, 1], [], []>} : vector<128x128xbf16>, vector<128x128xbf16>, vector<128x128xf32> -> vector<128x128xf32>
    %c0_6 = arith.constant 0 : index
    %c0_7 = arith.constant 0 : index
    %6 = vector.load %arg3[%c0_6, %c0_7] : memref<1x128xf32, #tpu.memory_space<vmem>>, vector<1x128xf32>
    %7 = vector.broadcast %6 : vector<1x128xf32> to vector<128x128xf32>
    %8 = arith.addf %5, %7 : vector<128x128xf32>
    %cst_8 = arith.constant 0.000000e+00 : f32
    %9 = vector.broadcast %cst_8 : f32 to vector<128x128xf32>
    %10 = arith.maximumf %8, %9 : vector<128x128xf32>
    %c0_9 = arith.constant 0 : index
    %c0_10 = arith.constant 0 : index
    %11 = vector.load %arg7[%c0_9, %c0_10] : memref<128x128xf32, #tpu.memory_space<vmem>>, vector<128x128xf32>
    tpu.vector_store %arg7[%c0_9, %c0_10], %10 {strides = array<i32>} : memref<128x128xf32, #tpu.memory_space<vmem>>, vector<128x128xf32>,
    %c0_11 = arith.constant 0 : index
    %c0_12 = arith.constant 0 : index
    %12 = vector.load %arg7[%c0_11, %c0_12] : memref<128x128xf32, #tpu.memory_space<vmem>>, vector<128x128xf32>
    %13 = arith.truncf %12 : vector<128x128xf32> to vector<128x128xbf16>
    %c0_13 = arith.constant 0 : index
    %c0_14 = arith.constant 0 : index
    %14 = vector.load %arg4[%c0_13, %c0_14] : memref<128x128xbf16, #tpu.memory_space<vmem>>, vector<128x128xbf16>
    %cst_15 = arith.constant dense<0.000000e+00> : vector<128x128xf32>
    %15 = tpu.matmul %13, %14, %cst_15 {dimension_numbers = #tpu.dot_dimension_numbers<[1], [0], [0], [1], [0, 0, 1, 1], [], []>} : vector<128x128xbf16>, vector<128x128xbf16>, vector<128x128xf32> -> vector<128x128xf32>
    %c0_16 = arith.constant 0 : index
    %c0_17 = arith.constant 0 : index
    %16 = vector.load %arg0[%c0_16, %c0_17] : memref<128x128xbf16, #tpu.memory_space<vmem>>, vector<128x128xbf16>
    %17 = arith.truncf %15 : vector<128x128xf32> to vector<128x128xbf16>
    %cst_18 = arith.constant dense<0.000000e+00> : vector<128x128xf32>
    %18 = tpu.matmul %16, %17, %cst_18 {dimension_numbers = #tpu.dot_dimension_numbers<[1], [0], [0], [1], [0, 0, 1, 1], [], []>} : vector<128x128xbf16>, vector<128x128xbf16>, vector<128x128xf32> -> vector<128x128xf32>
    %c0_19 = arith.constant 0 : index
    %c0_20 = arith.constant 0 : index
    %19 = vector.load %arg5[%c0_19, %c0_20] : memref<1x128xf32, #tpu.memory_space<vmem>>, vector<1x128xf32>
    %20 = vector.broadcast %19 : vector<1x128xf32> to vector<128x128xf32>
    %21 = arith.addf %18, %20 : vector<128x128xf32>
    %c0_21 = arith.constant 0 : index
    %c0_22 = arith.constant 0 : index
    %22 = vector.load %arg6[%c0_21, %c0_22] : memref<128x128xf32, #tpu.memory_space<vmem>>, vector<128x128xf32>
    tpu.vector_store %arg6[%c0_21, %c0_22], %21 {strides = array<i32>} : memref<128x128xf32, #tpu.memory_space<vmem>>, vector<128x128xf32>,
    return
  }
}

</mosaic_0001>

<bundles_post_ra>
// kernel: tpu_custom_call.1
= control target key start
LH: loop header
LB: loop body
LE: loop exit
PB: predicated region body
PF: predicated region fallthrough
CT: control target
= control target key end

     0   :  { %11 = vsyncpa [#allocation4], 0  ;;  %s1377_s0 = inlined_call_operand.hbm [shape: bf16[128,128], index: 0, kind: input, shape index: {}]   ;;  %s1378_s1 = inlined_call_operand.hbm [shape: bf16[128,128], index: 1, kind: input, shape index: {}]   ;;  %s1379_s2 = inlined_call_operand.hbm [shape: bf16[128,128], index: 2, kind: input, shape index: {}]   ;;  %s1380_s3 = inlined_call_operand.vmem [shape: f32[1,128], index: 3, kind: input, shape index: {}]   ;;  %s1381_s4 = inlined_call_operand.hbm [shape: bf16[128,128], index: 4, kind: input, shape index: {}]   ;;  %s1382_s5 = inlined_call_operand.vmem [shape: f32[1,128], index: 5, kind: input, shape index: {}]   ;;  %s1383_s6 = inlined_call_operand.hbm [shape: f32[128,128], index: 6, kind: output, shape index: {}]  }
   0x1   :  { %12 = vsyncpa [#allocation7], 0 }
   0x2   :  { %13 = vsyncpa [#allocation10], 0 }
   0x3   :  { %14 = vsyncpa [#allocation5], 0  ;;  %s1300_s21 = smov [#allocation6]   ;;  %s1301_s23 = smov [#allocation3]  }
   0x4   :  { %s32_s22 = sshll.u32 %s1300_s21, 4  ;;  %s20_s24 = sshll.u32 %s1301_s23, 4  ;;  %s33_s22 = int_to_ptr.vmem [resolvable:$true] %s32_s22  ;;  %s21_s24 = int_to_ptr.vmem [resolvable:$true] %s20_s24 }
   0x5   :  { %s1200_s25 = scalar_lea.vmem %s33_s22, 1024  ;;  %p1205_p1 = scmp.lt.s32.totalorder %s33_s22, %s33_s22 }
   0x6   :  { %p1201_p0 = scmp.ne.s32.totalorder %s33_s22, %s1200_s25  ;;  %p1206_p2 = scmp.lt.s32.totalorder %s1200_s25, %s1200_s25 }
   0x8   :  { %p1207_p3 = por %p1206_p2, %p1205_p1 }
   0xa   :  { %p1208_p4 = pnand %p1207_p3, %p1201_p0 }
   0xc   :  { %1211 = shalt.err (!%p1208_p4)
}
   0xd   :  { %s1302_s26 = smov 64   ;;  %s1303_s27 = smov 4  }
   0xe   :  { %38 = dma.hbm_to_vmem [thread:$0]  %s1378_s1, 1024, %s33_s22, [#allocation7], %s1302_s26, %s1302_s26, %s1303_s27  }
   0xf   :  { %s1220_s30 = scalar_lea.vmem %s21_s24, 1024  ;;  %p1225_p6 = scmp.lt.s32.totalorder %s21_s24, %s21_s24 }
  0x10   :  { %p1221_p5 = scmp.ne.s32.totalorder %s21_s24, %s1220_s30  ;;  %p1226_p7 = scmp.lt.s32.totalorder %s1220_s30, %s1220_s30 }
  0x12   :  { %p1227_p8 = por %p1226_p7, %p1225_p6 }
  0x14   :  { %p1228_p9 = pnand %p1227_p8, %p1221_p5 }
  0x16   :  { %1231 = shalt.err (!%p1228_p9)
}
  0x17   :  { %26 = dma.hbm_to_vmem [thread:$0]  %s1377_s0, 1024, %s21_s24, [#allocation4], %s1302_s26, %s1302_s26, %s1303_s27  }
  0x18   :  { %s1304_s9 = smov [#allocation8]   ;;  %s1305_s11 = smov [#allocation9]  }
  0x19   :  { %s44_s10 = sshll.u32 %s1304_s9, 4  ;;  %s58_s12 = sshll.u32 %s1305_s11, 4  ;;  %s45_s10 = int_to_ptr.vmem [resolvable:$true] %s44_s10  ;;  %s59_s12 = int_to_ptr.vmem [resolvable:$true] %s58_s12 }
  0x1a   :  { %s1240_s1 = scalar_lea.vmem %s45_s10, 1024  ;;  %p1245_p11 = scmp.lt.s32.totalorder %s45_s10, %s45_s10 }
  0x1b   :  { %p1241_p10 = scmp.ne.s32.totalorder %s45_s10, %s1240_s1  ;;  %p1246_p12 = scmp.lt.s32.totalorder %s1240_s1, %s1240_s1 }
  0x1d   :  { %p1247_p13 = por %p1246_p12, %p1245_p11 }
  0x1f   :  { %p1248_p0 = pnand %p1247_p13, %p1241_p10 }
  0x21   :  { %1251 = shalt.err (!%p1248_p0)
}
  0x22   :  { %50 = dma.hbm_to_vmem [thread:$0]  %s1379_s2, 1024, %s45_s10, [#allocation7], %s1302_s26, %s1302_s26, %s1303_s27  }
  0x23   :  { %s1260_s0 = scalar_lea.vmem %s59_s12, 1024  ;;  %p1265_p2 = scmp.lt.s32.totalorder %s59_s12, %s59_s12 }
  0x24   :  { %p1261_p1 = scmp.ne.s32.totalorder %s59_s12, %s1260_s0  ;;  %p1266_p3 = scmp.lt.s32.totalorder %s1260_s0, %s1260_s0 }
  0x26   :  { %p1267_p4 = por %p1266_p3, %p1265_p2 }
  0x28   :  { %p1268_p5 = pnand %p1267_p4, %p1261_p1 }
  0x2a   :  { %1271 = shalt.err (!%p1268_p5)
}
  0x2b   :  { %64 = dma.hbm_to_vmem [thread:$0]  %s1381_s4, 1024, %s59_s12, [#allocation10], %s1302_s26, %s1302_s26, %s1303_s27  }
  0x2c   :  { %1292 = dma.done.wait [#allocation4], 1024  }
  0x2d   :  { %1293 = vsyncadd [#allocation4], 4294966272 }
  0x2e   :  { %1294 = dma.done.wait [#allocation7], 2048  }
  0x2f   :  { %1295 = vsyncadd [#allocation7], 4294965248 }
  0x30   :  { %1296 = dma.done.wait [#allocation10], 1024  }
  0x31   :  { %1297 = vsyncadd [#allocation10], 4294966272  ;;  %v1152_v0 = vld [vmem:[#allocation8 + $0x38] sm:$0xff]   ;;  %v1153_v1 = vld [vmem:[#allocation8 + $0x30] sm:$0xff]  }
  0x32   :  { %1015 = vmatprep.subr.bf16.mxu0 %v1152_v0  ;;  %v1154_v2 = vld [vmem:[#allocation8 + $0x28] sm:$0xff]   ;;  %v1155_v3 = vld [vmem:[#allocation8 + $0x20] sm:$0xff]   ;;  %v1156_v5 = vld [vmem:[#allocation8 + $0x18] sm:$0xff]  }
  0x33   :  { %1016 = vmatpush3.bf16.msra.mxu0 %v1152_v0  ;;  %v1160_v4 = vld [vmem:[#allocation6] sm:$0xff]   ;;  %v1157_v6 = vld [vmem:[#allocation8 + $0x10] sm:$0xff]   ;;  %v1158_v7 = vld [vmem:[#allocation8 + $0x8] sm:$0xff]  }
  0x34   :  { %1017 = vmatprep.subr.bf16.mxu0 %v1153_v1  ;;  %1031 = vmatprep.mubr.bf16.mxu0 %v1160_v4  ;;  %v1159_v8 = vld [vmem:[#allocation8] sm:$0xff]   ;;  %v1161_v9 = vld [vmem:[#allocation6 + $0x8] sm:$0xff]   ;;  %v1162_v10 = vld [vmem:[#allocation6 + $0x10] sm:$0xff]  }
  0x35   :  { %v1163_v11 = vld [vmem:[#allocation6 + $0x18] sm:$0xff]   ;;  %v1164_v12 = vld [vmem:[#allocation6 + $0x20] sm:$0xff]   ;;  %v1165_v13 = vld [vmem:[#allocation6 + $0x28] sm:$0xff]  }
  0x36   :  { %v1166_v14 = vld [vmem:[#allocation6 + $0x30] sm:$0xff]   ;;  %v1167_v15 = vld [vmem:[#allocation6 + $0x38] sm:$0xff]   ;;  %v1168_v16 = vld [vmem:[#allocation3] sm:$0xff]  }
  0x37   :  { %1018 = vmatpush3.bf16.msra.mxu0 %v1153_v1  ;;  %1063 = vmatprep.mubr.bf16.mxu1 %v1168_v16  ;;  %v1176_v17 = vld [vmem:[#allocation9 + $0x38] sm:$0xff]   ;;  %v1177_v18 = vld [vmem:[#allocation9 + $0x30] sm:$0xff]   ;;  %v1178_v19 = vld [vmem:[#allocation9 + $0x28] sm:$0xff]  }
  0x38   :  { %1019 = vmatprep.subr.bf16.mxu0 %v1154_v2  ;;  %v1179_v20 = vld [vmem:[#allocation9 + $0x20] sm:$0xff]   ;;  %v1180_v21 = vld [vmem:[#allocation9 + $0x18] sm:$0xff]   ;;  %v1169_v46 = vld [vmem:[#allocation3 + $0x8] sm:$0xff]  }
  0x39   :  { %v1170_v47 = vld [vmem:[#allocation3 + $0x10] sm:$0xff]   ;;  %v1171_v48 = vld [vmem:[#allocation3 + $0x18] sm:$0xff]   ;;  %v1172_v49 = vld [vmem:[#allocation3 + $0x20] sm:$0xff]  }
  0x3a   :  { %v1173_v50 = vld [vmem:[#allocation3 + $0x28] sm:$0xff]   ;;  %v1174_v51 = vld [vmem:[#allocation3 + $0x30] sm:$0xff]   ;;  %v1175_v52 = vld [vmem:[#allocation3 + $0x38] sm:$0xff]  }
  0x3b   :  { %1020 = vmatpush3.bf16.msra.mxu0 %v1154_v2  ;;  %v1181_v53 = vld [vmem:[#allocation9 + $0x10] sm:$0xff]   ;;  %v1182_v54 = vld [vmem:[#allocation9 + $0x8] sm:$0xff]   ;;  %v1183_v55 = vld [vmem:[#allocation9] sm:$0xff]  }
  0x3c   :  { %1021 = vmatprep.subr.bf16.mxu0 %v1155_v3  ;;  %v925_v58 = vld [vmem:[%s1380_s3] ss:$0 sm:$0xff] }
  0x3f   :  { %1022 = vmatpush3.bf16.msra.mxu0 %v1155_v3 }
  0x40   :  { %1023 = vmatprep.subr.bf16.mxu0 %v1156_v5 }
  0x43   :  { %1024 = vmatpush3.bf16.msra.mxu0 %v1156_v5 }
  0x44   :  { %1025 = vmatprep.subr.bf16.mxu0 %v1157_v6 }
  0x47   :  { %1026 = vmatpush3.bf16.msra.mxu0 %v1157_v6 }
  0x48   :  { %1027 = vmatprep.subr.bf16.mxu0 %v1158_v7 }
  0x4b   :  { %1028 = vmatpush3.bf16.msra.mxu0 %v1158_v7 }
  0x4c   :  { %1029 = vmatprep.subr.bf16.mxu0 %v1159_v8 }
  0x4f   :  { %1030 = vmatpush3.bf16.msra.mxu0 %v1159_v8 }
  0x50   :  { %1079 = vmatprep.subr.bf16.mxu0 %v1176_v17 }
  0x52   :  { %1032 = vmatmul.mubr.bf16.vlgmr.msra.gmra.mxu0 %v1161_v9 }
  0x53   :  { %1035 = vmatprep.mubr.bf16.mxu0 %v1162_v10  ;;  %1080 = vmatpush3.bf16.msra.mxu0 %v1176_v17 }
  0x54   :  { %1081 = vmatprep.subr.bf16.mxu0 %v1177_v18 }
  0x57   :  { %1082 = vmatpush3.bf16.msra.mxu0 %v1177_v18 }
  0x58   :  { %1083 = vmatprep.subr.bf16.mxu0 %v1178_v19 }
  0x5a   :  { %1036 = vmatmul.mubr.bf16.gmra.mxu0 %v1163_v11 }
  0x5b   :  { %1039 = vmatprep.mubr.bf16.mxu0 %v1164_v12  ;;  %1084 = vmatpush3.bf16.msra.mxu0 %v1178_v19 }
  0x5c   :  { %1085 = vmatprep.subr.bf16.mxu0 %v1179_v20 }
  0x5f   :  { %1086 = vmatpush3.bf16.msra.mxu0 %v1179_v20 }
  0x60   :  { %1087 = vmatprep.subr.bf16.mxu0 %v1180_v21 }
  0x62   :  { %1040 = vmatmul.mubr.bf16.gmra.mxu0 %v1165_v13 }
  0x63   :  { %1043 = vmatprep.mubr.bf16.mxu0 %v1166_v14  ;;  %1088 = vmatpush3.bf16.msra.mxu0 %v1180_v21 }
  0x64   :  { %1089 = vmatprep.subr.bf16.mxu0 %v1181_v53 }
  0x67   :  { %1090 = vmatpush3.bf16.msra.mxu0 %v1181_v53 }
  0x68   :  { %1091 = vmatprep.subr.bf16.mxu0 %v1182_v54 }
  0x6a   :  { %1044 = vmatmul.mubr.bf16.gmra.mxu0 %v1167_v15 }
  0x6b   :  { %1092 = vmatpush3.bf16.msra.mxu0 %v1182_v54 }
  0x6c   :  { %1093 = vmatprep.subr.bf16.mxu0 %v1183_v55 }
  0x6f   :  { %1094 = vmatpush3.bf16.msra.mxu0 %v1183_v55 }
 0x112   :  { %v1033_v22 = vpop.f32.mrf.mxu0 }
 0x114   :  { %v242_v23 = vpop.f32.mrf.mxu0 }
 0x116   :  { %v1034_v24 = vpop.f32.mrf.mxu0 }
 0x117   :  { %v322_v44 = vpack.c.bf16 %v1034_v24, %v1033_v22 }
 0x118   :  { %v245_v25 = vpop.f32.mrf.mxu0 }
 0x119   :  { %v321_v45 = vpack.c.bf16 %v245_v25, %v242_v23 }
 0x11a   :  { %v1037_v26 = vpop.f32.mrf.mxu0 }
 0x11c   :  { %v258_v27 = vpop.f32.mrf.mxu0 }
 0x11e   :  { %v1038_v28 = vpop.f32.mrf.mxu0 }
 0x11f   :  { %v324_v42 = vpack.c.bf16 %v1038_v28, %v1037_v26 }
 0x120   :  { %v261_v29 = vpop.f32.mrf.mxu0 }
 0x121   :  { %v323_v43 = vpack.c.bf16 %v261_v29, %v258_v27 }
 0x122   :  { %v1041_v30 = vpop.f32.mrf.mxu0 }
 0x124   :  { %v274_v31 = vpop.f32.mrf.mxu0 }
 0x126   :  { %v1042_v32 = vpop.f32.mrf.mxu0 }
 0x127   :  { %v326_v40 = vpack.c.bf16 %v1042_v32, %v1041_v30 }
 0x128   :  { %v277_v33 = vpop.f32.mrf.mxu0 }
 0x129   :  { %v325_v41 = vpack.c.bf16 %v277_v33, %v274_v31 }
 0x12a   :  { %v1045_v34 = vpop.f32.mrf.mxu0 }
 0x12c   :  { %v290_v35 = vpop.f32.mrf.mxu0 }
 0x12e   :  { %v1046_v36 = vpop.f32.mrf.mxu0 }
 0x12f   :  { %v328_v37 = vpack.c.bf16 %v1046_v36, %v1045_v34 }
 0x130   :  { %v293_v38 = vpop.f32.mrf.mxu0 }
 0x131   :  { %v327_v39 = vpack.c.bf16 %v293_v38, %v290_v35  ;;  %1047 = vmatprep.subr.bf16.mxu1 %v328_v37 }
 0x132   :  { %1048 = vmatpush3.bf16.msra.mxu1 %v328_v37 }
 0x133   :  { %1049 = vmatprep.subr.bf16.mxu1 %v327_v39 }
 0x136   :  { %1050 = vmatpush3.bf16.msra.mxu1 %v327_v39 }
 0x137   :  { %1051 = vmatprep.subr.bf16.mxu1 %v326_v40 }
 0x13a   :  { %1052 = vmatpush3.bf16.msra.mxu1 %v326_v40 }
 0x13b   :  { %1053 = vmatprep.subr.bf16.mxu1 %v325_v41 }
 0x13e   :  { %1054 = vmatpush3.bf16.msra.mxu1 %v325_v41 }
 0x13f   :  { %1055 = vmatprep.subr.bf16.mxu1 %v324_v42 }
 0x142   :  { %1056 = vmatpush3.bf16.msra.mxu1 %v324_v42 }
 0x143   :  { %1057 = vmatprep.subr.bf16.mxu1 %v323_v43 }
 0x146   :  { %1058 = vmatpush3.bf16.msra.mxu1 %v323_v43 }
 0x147   :  { %1059 = vmatprep.subr.bf16.mxu1 %v322_v44 }
 0x14a   :  { %1060 = vmatpush3.bf16.msra.mxu1 %v322_v44 }
 0x14b   :  { %1061 = vmatprep.subr.bf16.mxu1 %v321_v45 }
 0x14e   :  { %1062 = vmatpush3.bf16.msra.mxu1 %v321_v45 }
 0x151   :  { %1064 = vmatmul.mubr.bf16.vlgmr.msra.gmra.mxu1 %v1169_v46 }
 0x152   :  { %1067 = vmatprep.mubr.bf16.mxu1 %v1170_v47 }
 0x159   :  { %1068 = vmatmul.mubr.bf16.gmra.mxu1 %v1171_v48 }
 0x15a   :  { %1071 = vmatprep.mubr.bf16.mxu1 %v1172_v49  ;;  %v1184_v49 = vld [vmem:[#allocation3] sm:$0xff]  }
 0x161   :  { %1072 = vmatmul.mubr.bf16.gmra.mxu1 %v1173_v50 }
 0x162   :  { %1075 = vmatprep.mubr.bf16.mxu1 %v1174_v51 }
 0x169   :  { %1076 = vmatmul.mubr.bf16.gmra.mxu1 %v1175_v52 }
 0x16a   :  { %1127 = vmatprep.mubr.bf16.mxu1 %v1184_v49 }
 0x211   :  { %v1065_v56 = vpop.f32.mrf.mxu1 }
 0x212   :  { %v427_v62 = vadd.f32 %v1065_v56, %v925_v58 }
 0x213   :  { %v418_v57 = vpop.f32.mrf.mxu1 }
 0x214   :  { %v419_v60 = vadd.f32 %v925_v58, %v418_v57  ;;  %v483_v5 = vmax.f32 %v427_v62, 0.0 }
 0x215   :  { %v1066_v59 = vpop.f32.mrf.mxu1 }
 0x216   :  { %v430_v61 = vadd.f32 %v1066_v59, %v925_v58  ;;  %v481_v3 = vmax.f32 %v419_v60, 0.0 }
 0x217   :  { %v421_v63 = vpop.f32.mrf.mxu1 }
 0x218   :  { %v422_v0 = vadd.f32 %v925_v58, %v421_v63  ;;  %v484_v1 = vmax.f32 %v430_v61, 0.0 }
 0x219   :  { %v1069_v2 = vpop.f32.mrf.mxu1 }
 0x21a   :  { %v482_v4 = vmax.f32 %v422_v0, 0.0  ;;  %v530_v8 = vpack.c.bf16 %v484_v1, %v483_v5  ;;  %v443_v12 = vadd.f32 %v1069_v2, %v925_v58 }
 0x21b   :  { %v434_v6 = vpop.f32.mrf.mxu1 }
 0x21c   :  { %v529_v7 = vpack.c.bf16 %v482_v4, %v481_v3  ;;  %v435_v10 = vadd.f32 %v925_v58, %v434_v6  ;;  %v487_v19 = vmax.f32 %v443_v12, 0.0  ;;  %v1187_v12 = vld [vmem:[#allocation3 + $0x18] sm:$0xff]  }
 0x21d   :  { %v1070_v9 = vpop.f32.mrf.mxu1 }
 0x21e   :  { %v446_v11 = vadd.f32 %v1070_v9, %v925_v58  ;;  %1095 = vmatprep.mubr.bf16.mxu0 %v529_v7  ;;  %v485_v17 = vmax.f32 %v435_v10, 0.0  ;;  %v1185_v10 = vld [vmem:[#allocation3 + $0x8] sm:$0xff]  }
 0x21f   :  { %v437_v13 = vpop.f32.mrf.mxu1  ;;  %1096 = vmatmul.mubr.bf16.vlgmr.msra.gmra.mxu0 %v530_v8 }
 0x220   :  { %v438_v14 = vadd.f32 %v925_v58, %v437_v13  ;;  %v488_v15 = vmax.f32 %v446_v11, 0.0  ;;  %v1186_v11 = vld [vmem:[#allocation3 + $0x10] sm:$0xff]   ;;  %v1188_v13 = vld [vmem:[#allocation3 + $0x20] sm:$0xff]  }
 0x221   :  { %v1073_v16 = vpop.f32.mrf.mxu1 }
 0x222   :  { %v486_v18 = vmax.f32 %v438_v14, 0.0  ;;  %v532_v22 = vpack.c.bf16 %v488_v15, %v487_v19  ;;  %v459_v26 = vadd.f32 %v1073_v16, %v925_v58  ;;  %v1189_v14 = vld [vmem:[#allocation3 + $0x28] sm:$0xff]   ;;  %v1190_v15 = vld [vmem:[#allocation3 + $0x30] sm:$0xff]   ;;  %v1191_v16 = vld [vmem:[#allocation3 + $0x38] sm:$0xff]  }
 0x223   :  { %v450_v20 = vpop.f32.mrf.mxu1 }
 0x224   :  { %v531_v21 = vpack.c.bf16 %v486_v18, %v485_v17  ;;  %v451_v24 = vadd.f32 %v925_v58, %v450_v20  ;;  %v491_v33 = vmax.f32 %v459_v26, 0.0  ;;  %v942_v17 = vld [vmem:[%s1382_s5] ss:$0 sm:$0xff]  ;;  %s1306_s5 = smov [#allocation11]  }
 0x225   :  { %v1074_v23 = vpop.f32.mrf.mxu1  ;;  %s895_s18 = sshll.u32 %s1306_s5, 4  ;;  %s896_s18 = int_to_ptr.vmem [resolvable:$true] %s895_s18 }
 0x226   :  { %v462_v25 = vadd.f32 %v1074_v23, %v925_v58  ;;  %1099 = vmatprep.mubr.bf16.mxu0 %v531_v21  ;;  %v489_v31 = vmax.f32 %v451_v24, 0.0  ;;  %s1272_s19 = scalar_lea.vmem %s896_s18, 2048  ;;  %p1277_p7 = scmp.lt.s32.totalorder %s896_s18, %s896_s18 }
 0x227   :  { %v453_v27 = vpop.f32.mrf.mxu1  ;;  %1100 = vmatmul.mubr.bf16.gmra.mxu0 %v532_v22  ;;  %p1273_p6 = scmp.ne.s32.totalorder %s896_s18, %s1272_s19  ;;  %p1278_p8 = scmp.lt.s32.totalorder %s1272_s19, %s1272_s19 }
 0x228   :  { %v454_v28 = vadd.f32 %v925_v58, %v453_v27  ;;  %v492_v29 = vmax.f32 %v462_v25, 0.0 }
 0x229   :  { %v1077_v30 = vpop.f32.mrf.mxu1  ;;  %p1279_p9 = por %p1278_p8, %p1277_p7 }
 0x22a   :  { %v490_v32 = vmax.f32 %v454_v28, 0.0  ;;  %v534_v36 = vpack.c.bf16 %v492_v29, %v491_v33  ;;  %v475_v40 = vadd.f32 %v1077_v30, %v925_v58 }
 0x22b   :  { %v466_v34 = vpop.f32.mrf.mxu1  ;;  %p1280_p10 = pnand %p1279_p9, %p1273_p6 }
 0x22c   :  { %v533_v35 = vpack.c.bf16 %v490_v32, %v489_v31  ;;  %v467_v38 = vadd.f32 %v925_v58, %v466_v34  ;;  %v495_v46 = vmax.f32 %v475_v40, 0.0 }
 0x22d   :  { %v1078_v37 = vpop.f32.mrf.mxu1 }
 0x22e   :  { %v478_v39 = vadd.f32 %v1078_v37, %v925_v58  ;;  %1103 = vmatprep.mubr.bf16.mxu0 %v533_v35  ;;  %v493_v44 = vmax.f32 %v467_v38, 0.0 }
 0x22f   :  { %v469_v41 = vpop.f32.mrf.mxu1  ;;  %1104 = vmatmul.mubr.bf16.gmra.mxu0 %v534_v36 }
 0x230   :  { %v470_v42 = vadd.f32 %v925_v58, %v469_v41  ;;  %v496_v43 = vmax.f32 %v478_v39, 0.0 }
 0x232   :  { %v494_v45 = vmax.f32 %v470_v42, 0.0  ;;  %v536_v48 = vpack.c.bf16 %v496_v43, %v495_v46 }
 0x234   :  { %v535_v47 = vpack.c.bf16 %v494_v45, %v493_v44 }
 0x236   :  { %1107 = vmatprep.mubr.bf16.mxu0 %v535_v47 }
 0x237   :  { %1108 = vmatmul.mubr.bf16.gmra.mxu0 %v536_v48 }
 0x2df   :  { %v1097_v50 = vpop.f32.mrf.mxu0 }
 0x2e1   :  { %v635_v51 = vpop.f32.mrf.mxu0 }
 0x2e3   :  { %v1098_v52 = vpop.f32.mrf.mxu0 }
 0x2e4   :  { %v715_v8 = vpack.c.bf16 %v1098_v52, %v1097_v50 }
 0x2e5   :  { %v638_v53 = vpop.f32.mrf.mxu0 }
 0x2e6   :  { %v714_v9 = vpack.c.bf16 %v638_v53, %v635_v51 }
 0x2e7   :  { %v1101_v54 = vpop.f32.mrf.mxu0 }
 0x2e9   :  { %v651_v55 = vpop.f32.mrf.mxu0 }
 0x2eb   :  { %v1102_v56 = vpop.f32.mrf.mxu0 }
 0x2ec   :  { %v717_v6 = vpack.c.bf16 %v1102_v56, %v1101_v54 }
 0x2ed   :  { %v654_v57 = vpop.f32.mrf.mxu0 }
 0x2ee   :  { %v716_v7 = vpack.c.bf16 %v654_v57, %v651_v55 }
 0x2ef   :  { %v1105_v59 = vpop.f32.mrf.mxu0 }
 0x2f1   :  { %v667_v58 = vpop.f32.mrf.mxu0 }
 0x2f3   :  { %v1106_v60 = vpop.f32.mrf.mxu0 }
 0x2f4   :  { %v719_v4 = vpack.c.bf16 %v1106_v60, %v1105_v59 }
 0x2f5   :  { %v670_v61 = vpop.f32.mrf.mxu0 }
 0x2f6   :  { %v718_v5 = vpack.c.bf16 %v670_v61, %v667_v58 }
 0x2f7   :  { %v1109_v62 = vpop.f32.mrf.mxu0 }
 0x2f9   :  { %v683_v63 = vpop.f32.mrf.mxu0 }
 0x2fb   :  { %v1110_v0 = vpop.f32.mrf.mxu0 }
 0x2fc   :  { %v721_v1 = vpack.c.bf16 %v1110_v0, %v1109_v62 }
 0x2fd   :  { %v686_v2 = vpop.f32.mrf.mxu0 }
 0x2fe   :  { %v720_v3 = vpack.c.bf16 %v686_v2, %v683_v63  ;;  %1111 = vmatprep.subr.bf16.mxu1 %v721_v1 }
 0x2ff   :  { %1112 = vmatpush3.bf16.msra.mxu1 %v721_v1 }
 0x300   :  { %1113 = vmatprep.subr.bf16.mxu1 %v720_v3 }
 0x303   :  { %1114 = vmatpush3.bf16.msra.mxu1 %v720_v3 }
 0x304   :  { %1115 = vmatprep.subr.bf16.mxu1 %v719_v4 }
 0x307   :  { %1116 = vmatpush3.bf16.msra.mxu1 %v719_v4 }
 0x308   :  { %1117 = vmatprep.subr.bf16.mxu1 %v718_v5 }
 0x30b   :  { %1118 = vmatpush3.bf16.msra.mxu1 %v718_v5 }
 0x30c   :  { %1119 = vmatprep.subr.bf16.mxu1 %v717_v6 }
 0x30f   :  { %1120 = vmatpush3.bf16.msra.mxu1 %v717_v6 }
 0x310   :  { %1121 = vmatprep.subr.bf16.mxu1 %v716_v7 }
 0x313   :  { %1122 = vmatpush3.bf16.msra.mxu1 %v716_v7 }
 0x314   :  { %1123 = vmatprep.subr.bf16.mxu1 %v715_v8 }
 0x317   :  { %1124 = vmatpush3.bf16.msra.mxu1 %v715_v8 }
 0x318   :  { %1125 = vmatprep.subr.bf16.mxu1 %v714_v9 }
 0x31b   :  { %1126 = vmatpush3.bf16.msra.mxu1 %v714_v9 }
 0x31e   :  { %1128 = vmatmul.mubr.bf16.vlgmr.msra.gmra.mxu1 %v1185_v10 }
 0x31f   :  { %1131 = vmatprep.mubr.bf16.mxu1 %v1186_v11 }
 0x326   :  { %1132 = vmatmul.mubr.bf16.gmra.mxu1 %v1187_v12 }
 0x327   :  { %1135 = vmatprep.mubr.bf16.mxu1 %v1188_v13 }
 0x32e   :  { %1136 = vmatmul.mubr.bf16.gmra.mxu1 %v1189_v14 }
 0x32f   :  { %1139 = vmatprep.mubr.bf16.mxu1 %v1190_v15 }
 0x336   :  { %1140 = vmatmul.mubr.bf16.gmra.mxu1 %v1191_v16 }
 0x3de   :  { %v1129_v18 = vpop.f32.mrf.mxu1 }
 0x3df   :  { %v820_v19 = vadd.f32 %v1129_v18, %v942_v17 }
 0x3e0   :  { %v811_v20 = vpop.f32.mrf.mxu1 }
 0x3e1   :  { %876 = vst [vmem:[#allocation11 + $0x10] sm:$0xff] %v820_v19  ;;  %v812_v21 = vadd.f32 %v942_v17, %v811_v20 }
 0x3e2   :  { %v1130_v22 = vpop.f32.mrf.mxu1 }
 0x3e3   :  { %874 = vst [vmem:[#allocation11] sm:$0xff] %v812_v21  ;;  %v823_v23 = vadd.f32 %v1130_v22, %v942_v17 }
 0x3e4   :  { %v814_v24 = vpop.f32.mrf.mxu1 }
 0x3e5   :  { %877 = vst [vmem:[#allocation11 + $0x18] sm:$0xff] %v823_v23  ;;  %v815_v25 = vadd.f32 %v942_v17, %v814_v24 }
 0x3e6   :  { %v1133_v26 = vpop.f32.mrf.mxu1 }
 0x3e7   :  { %875 = vst [vmem:[#allocation11 + $0x8] sm:$0xff] %v815_v25  ;;  %v836_v27 = vadd.f32 %v1133_v26, %v942_v17 }
 0x3e8   :  { %v827_v28 = vpop.f32.mrf.mxu1 }
 0x3e9   :  { %880 = vst [vmem:[#allocation11 + $0x30] sm:$0xff] %v836_v27  ;;  %v828_v29 = vadd.f32 %v942_v17, %v827_v28 }
 0x3ea   :  { %v1134_v30 = vpop.f32.mrf.mxu1 }
 0x3eb   :  { %878 = vst [vmem:[#allocation11 + $0x20] sm:$0xff] %v828_v29  ;;  %v839_v31 = vadd.f32 %v1134_v30, %v942_v17 }
 0x3ec   :  { %v830_v32 = vpop.f32.mrf.mxu1 }
 0x3ed   :  { %881 = vst [vmem:[#allocation11 + $0x38] sm:$0xff] %v839_v31  ;;  %v831_v33 = vadd.f32 %v942_v17, %v830_v32 }
 0x3ee   :  { %v1137_v34 = vpop.f32.mrf.mxu1 }
 0x3ef   :  { %879 = vst [vmem:[#allocation11 + $0x28] sm:$0xff] %v831_v33  ;;  %v852_v35 = vadd.f32 %v1137_v34, %v942_v17 }
 0x3f0   :  { %v843_v36 = vpop.f32.mrf.mxu1 }
 0x3f1   :  { %884 = vst [vmem:[#allocation11 + $0x50] sm:$0xff] %v852_v35  ;;  %v844_v37 = vadd.f32 %v942_v17, %v843_v36 }
 0x3f2   :  { %v1138_v38 = vpop.f32.mrf.mxu1 }
 0x3f3   :  { %882 = vst [vmem:[#allocation11 + $0x40] sm:$0xff] %v844_v37  ;;  %v855_v39 = vadd.f32 %v1138_v38, %v942_v17 }
 0x3f4   :  { %v846_v40 = vpop.f32.mrf.mxu1 }
 0x3f5   :  { %885 = vst [vmem:[#allocation11 + $0x58] sm:$0xff] %v855_v39  ;;  %v847_v41 = vadd.f32 %v942_v17, %v846_v40 }
 0x3f6   :  { %v1141_v42 = vpop.f32.mrf.mxu1 }
 0x3f7   :  { %883 = vst [vmem:[#allocation11 + $0x48] sm:$0xff] %v847_v41  ;;  %v868_v43 = vadd.f32 %v1141_v42, %v942_v17 }
 0x3f8   :  { %v859_v44 = vpop.f32.mrf.mxu1 }
 0x3f9   :  { %888 = vst [vmem:[#allocation11 + $0x70] sm:$0xff] %v868_v43  ;;  %v860_v45 = vadd.f32 %v942_v17, %v859_v44 }
 0x3fa   :  { %v1142_v46 = vpop.f32.mrf.mxu1 }
 0x3fb   :  { %886 = vst [vmem:[#allocation11 + $0x60] sm:$0xff] %v860_v45  ;;  %v871_v47 = vadd.f32 %v1142_v46, %v942_v17 }
 0x3fc   :  { %v862_v48 = vpop.f32.mrf.mxu1 }
 0x3fd   :  { %889 = vst [vmem:[#allocation11 + $0x78] sm:$0xff] %v871_v47  ;;  %v863_v49 = vadd.f32 %v942_v17, %v862_v48 }
 0x3ff   :  { %887 = vst [vmem:[#allocation11 + $0x68] sm:$0xff] %v863_v49 }
 0x400   :  { %1283 = shalt.err (!%p1280_p10)
}
 0x401   :  { %s1307_s20 = smov 128   ;;  %s1308_s21 = smov 8  }
 0x402   :  { %901 = dma.vmem_to_hbm [thread:$0]  %s896_s18, 2048, %s1383_s6, [#allocation5], %s1307_s20, %s1307_s20, %s1308_s21  }
 0x403   :  { %1298 = dma.done.wait [#allocation5], 2048  }
 0x404   :  { %1299 = vsyncadd [#allocation5], 4294965248 }
 0x405   :  { %905 = vsyncpa [#allocation4], 1 }
 0x406   :  { %906 = vsyncpa [#allocation7], 1 }
 0x407   :  { %907 = vsyncpa [#allocation10], 1 }
 0x408   :  { %908 = vsyncpa [#allocation5], 1 }

</bundles_post_ra>
